<compile_context>
chip_gen: v5e
topology: v5e:2x2
jax: 0.10.0
libtpu: 0.0.40
codegen_flags: <defaults>
</compile_context>

<pallas_src>
import jax
import jax.numpy as jnp
from jax.experimental import pallas as pl
from jax.experimental.pallas import tpu as pltpu


def mm_times2_kernel(x_ref, y_ref, o_ref, acc_ref):
    # Zero the accumulator at the start of the K reduction.
    @pl.when(pl.program_id(2) == 0)
    def _():
        acc_ref[...] = jnp.zeros_like(acc_ref)

    # Single MXU matmul per (i, j, k) step, accumulated in f32.
    acc_ref[...] += jnp.dot(
        x_ref[...], y_ref[...], preferred_element_type=jnp.float32
    )

    # Epilogue: fold the "v1 + v2" into a free VPU add of the accumulator.
    @pl.when(pl.program_id(2) == pl.num_programs(2) - 1)
    def _():
        acc = acc_ref[...]
        o_ref[...] = (acc + acc).astype(o_ref.dtype)


def model_forward(x, y, *, tm=128, tn=256, tk=256):
    M, K = x.shape
    K2, N = y.shape
    assert K == K2, "inner dims must match"

    # Clamp tiles to the array extents so small shapes stay legal
    # (a block dim must be a multiple of (8,128) OR equal the full dim).
    tm = min(tm, M)
    tn = min(tn, N)
    tk = min(tk, K)

    grid = (pl.cdiv(M, tm), pl.cdiv(N, tn), pl.cdiv(K, tk))

    return pl.pallas_call(
        mm_times2_kernel,
        out_shape=jax.ShapeDtypeStruct((M, N), x.dtype),
        grid_spec=pltpu.PrefetchScalarGridSpec(
            num_scalar_prefetch=0,
            grid=grid,
            in_specs=[
                pl.BlockSpec((tm, tk), lambda i, j, k: (i, k)),
                pl.BlockSpec((tk, tn), lambda i, j, k: (k, j)),
            ],
            # Output block index is independent of k -> stays resident
            # across the whole reduction, written once at k == last.
            out_specs=pl.BlockSpec((tm, tn), lambda i, j, k: (i, j)),
            scratch_shapes=[pltpu.VMEM((tm, tn), jnp.float32)],
        ),
        compiler_params=pltpu.CompilerParams(
            dimension_semantics=("parallel", "parallel", "arbitrary"),
        ),
    )(x, y)


if __name__ == "__main__":
    # Deterministic "parameters" (unused in forward, kept for module parity).
    p1 = jnp.float32(1.0)
    p2 = jnp.float32(2.0)

    key = jax.random.PRNGKey(0)
    kx, ky = jax.random.split(key)
    M, K, N = 32, 64, 128  # small shapes consistent with torch.mm(x, y)
    x = jax.random.normal(kx, (M, K), dtype=jnp.float32)
    y = jax.random.normal(ky, (K, N), dtype=jnp.float32)

    out = model_forward(x, y)
    out = jax.block_until_ready(out)

    # Reference check against plain-JAX semantics of the PyTorch module.
    ref = jnp.dot(x, y) + jnp.dot(x, y)
    assert out.shape == (M, N)
    assert jnp.allclose(out, ref, atol=1e-4, rtol=1e-4), "mismatch vs reference"

    print("KERNEL_OK")
</pallas_src>

<mosaic_0001>
module attributes {stable_mosaic.version = 11 : i64} {
  func.func @mm_times2_kernel(%arg0: i32, %arg1: i32, %arg2: i32, %arg3: memref<32x64xf32, #tpu.memory_space<vmem>>, %arg4: memref<64x128xf32, #tpu.memory_space<vmem>>, %arg5: memref<32x128xf32, #tpu.memory_space<vmem>>, %arg6: memref<32x128xf32, #tpu.memory_space<vmem>>) attributes {dimension_semantics = [#tpu.dimension_semantics<parallel>, #tpu.dimension_semantics<parallel>, #tpu.dimension_semantics<arbitrary>], iteration_bounds = array<i64: 1, 1, 1>, scalar_prefetch = 0 : i64, scratch_operands = 1 : i64, tpu.core_type = #tpu.core_type<tc>, window_params = [{transform_indices = @transform_0, window_bounds = array<i64: 32, 64>}, {transform_indices = @transform_1, window_bounds = array<i64: 64, 128>}, {transform_indices = @transform_2, window_bounds = array<i64: 32, 128>}]} {
    %c0_i32 = arith.constant 0 : i32
    %0 = arith.cmpi eq, %arg2, %c0_i32 : i32
    %1 = arith.extui %0 : i1 to i32
    %c0_i32_0 = arith.constant 0 : i32
    %2 = arith.cmpi ne, %1, %c0_i32_0 : i32
    scf.if %2 {
      %cst_10 = arith.constant 0.000000e+00 : f32
      %12 = vector.broadcast %cst_10 : f32 to vector<32x128xf32>
      %c0_11 = arith.constant 0 : index
      %c0_12 = arith.constant 0 : index
      %13 = vector.load %arg6[%c0_11, %c0_12] : memref<32x128xf32, #tpu.memory_space<vmem>>, vector<32x128xf32>
      tpu.vector_store %arg6[%c0_11, %c0_12], %12 {strides = array<i32>} : memref<32x128xf32, #tpu.memory_space<vmem>>, vector<32x128xf32>,
    } else {
    }
    %c0 = arith.constant 0 : index
    %c0_1 = arith.constant 0 : index
    %3 = vector.load %arg6[%c0, %c0_1] : memref<32x128xf32, #tpu.memory_space<vmem>>, vector<32x128xf32>
    %c0_2 = arith.constant 0 : index
    %c0_3 = arith.constant 0 : index
    %4 = vector.load %arg3[%c0_2, %c0_3] : memref<32x64xf32, #tpu.memory_space<vmem>>, vector<32x64xf32>
    %c0_4 = arith.constant 0 : index
    %c0_5 = arith.constant 0 : index
    %5 = vector.load %arg4[%c0_4, %c0_5] : memref<64x128xf32, #tpu.memory_space<vmem>>, vector<64x128xf32>
    %cst = arith.constant dense<0.000000e+00> : vector<32x128xf32>
    %6 = tpu.matmul %4, %5, %cst {dimension_numbers = #tpu.dot_dimension_numbers<[1], [0], [0], [1], [0, 0, 1, 1], [], []>} : vector<32x64xf32>, vector<64x128xf32>, vector<32x128xf32> -> vector<32x128xf32>
    %7 = arith.addf %3, %6 : vector<32x128xf32>
    %c0_6 = arith.constant 0 : index
    %c0_7 = arith.constant 0 : index
    %8 = vector.load %arg6[%c0_6, %c0_7] : memref<32x128xf32, #tpu.memory_space<vmem>>, vector<32x128xf32>
    tpu.vector_store %arg6[%c0_6, %c0_7], %7 {strides = array<i32>} : memref<32x128xf32, #tpu.memory_space<vmem>>, vector<32x128xf32>,
    %c0_i32_8 = arith.constant 0 : i32
    %9 = arith.cmpi eq, %arg2, %c0_i32_8 : i32
    %10 = arith.extui %9 : i1 to i32
    %c0_i32_9 = arith.constant 0 : i32
    %11 = arith.cmpi ne, %10, %c0_i32_9 : i32
    scf.if %11 {
      %c0_10 = arith.constant 0 : index
      %c0_11 = arith.constant 0 : index
      %12 = vector.load %arg6[%c0_10, %c0_11] : memref<32x128xf32, #tpu.memory_space<vmem>>, vector<32x128xf32>
      %13 = arith.addf %12, %12 : vector<32x128xf32>
      %c0_12 = arith.constant 0 : index
      %c0_13 = arith.constant 0 : index
      %14 = vector.load %arg5[%c0_12, %c0_13] : memref<32x128xf32, #tpu.memory_space<vmem>>, vector<32x128xf32>
      tpu.vector_store %arg5[%c0_12, %c0_13], %13 {strides = array<i32>} : memref<32x128xf32, #tpu.memory_space<vmem>>, vector<32x128xf32>,
    } else {
    }
    return
  }
  func.func @transform_0(%arg0: i32, %arg1: i32, %arg2: i32) -> (i32, i32) {
    %c0_i32 = arith.constant 0 : i32
    return %arg0, %arg2 : i32, i32
  }
  func.func @transform_1(%arg0: i32, %arg1: i32, %arg2: i32) -> (i32, i32) {
    %c0_i32 = arith.constant 0 : i32
    return %arg2, %arg1 : i32, i32
  }
  func.func @transform_2(%arg0: i32, %arg1: i32, %arg2: i32) -> (i32, i32) {
    %c0_i32 = arith.constant 0 : i32
    return %arg0, %arg1 : i32, i32
  }
}

</mosaic_0001>

<bundles_post_ra>
// kernel: tpu_custom_call.1
= control target key start
LH: loop header
LB: loop body
LE: loop exit
PB: predicated region body
PF: predicated region fallthrough
CT: control target
= control target key end

     0   :  { %7 = vsyncpa [#allocation4], 0  ;;  %s302_s0 = inlined_call_operand.hbm [shape: f32[32,64], index: 0, kind: input, shape index: {}]   ;;  %s303_s1 = inlined_call_operand.hbm [shape: f32[64,128], index: 1, kind: input, shape index: {}]   ;;  %s304_s2 = inlined_call_operand.hbm [shape: f32[32,128], index: 2, kind: output, shape index: {}]  }
   0x1   :  { %8 = vsyncpa [#allocation7], 0 }
   0x2   :  { %9 = vsyncpa [#allocation5], 0  ;;  %s14_s11 = sshll.u32 %s302_s0, 4  ;;  %s264_s12 = smov [#allocation3]   ;;  %s15_s11 = int_to_ptr.hbm [resolvable:$true] %s14_s11 }
   0x3   :  { %s16_s13 = sshll.u32 %s264_s12, 4  ;;  %s27_s16 = sshll.u32 %s303_s1, 4  ;;  %s17_s13 = int_to_ptr.vmem [resolvable:$true] %s16_s13  ;;  %s28_s16 = int_to_ptr.hbm [resolvable:$true] %s27_s16 }
   0x4   :  { %s265_s17 = smov 128   ;;  %s266_s18 = smov 8  }
   0x5   :  { %22 = dma.hbm_to_vmem [thread:$0]  %s15_s11, 512, %s17_s13, [#allocation4], %s265_s17, %s265_s17, %s266_s18  }
   0x6   :  { %s267_s19 = smov [#allocation6]  }
   0x7   :  { %s29_s20 = sshll.u32 %s267_s19, 4  ;;  %s30_s20 = int_to_ptr.vmem [resolvable:$true] %s29_s20 }
   0x8   :  { %35 = dma.hbm_to_vmem [thread:$0]  %s28_s16, 1024, %s30_s20, [#allocation7], %s265_s17, %s265_s17, %s266_s18  }
   0x9   :  { %258 = dma.done.wait [#allocation4], 512  }
   0xa   :  { %259 = vsyncadd [#allocation4], 4294966784 }
   0xb   :  { %260 = dma.done.wait [#allocation7], 1024  }
   0xc   :  { %261 = vsyncadd [#allocation7], 4294966272  ;;  %v67_v0 = vld [vmem:[#allocation6 + $0x38] sm:$0xff]  ;;  %v66_v1 = vld [vmem:[#allocation6 + $0x30] sm:$0xff]  ;;  %vm68_vm0 = vcmask 523264   ;;  %s268_s0 = smov [#allocation8]  }
   0xd   :  { %158 = vmatpush.msra.mxu2 %v67_v0  ;;  %159 = vmatpush.msra.mxu3 %v67_v0  ;;  %v65_v2 = vld [vmem:[#allocation6 + $0x28] sm:$0xff]  ;;  %v64_v3 = vld [vmem:[#allocation6 + $0x20] sm:$0xff]  ;;  %v63_v4 = vld [vmem:[#allocation6 + $0x18] sm:$0xff]  ;;  %s137_s1 = sshll.u32 %s268_s0, 4  ;;  %s139_s23 = sshll.u32 %s304_s2, 4  ;;  %s138_s1 = int_to_ptr.vmem [resolvable:$true] %s137_s1  ;;  %s140_s23 = int_to_ptr.hbm [resolvable:$true] %s139_s23 }
   0xe   :  { %89 = vmatpush.msra.mxu0 %v67_v0  ;;  %157 = vmatpush.msra.mxu1 %v67_v0  ;;  %v62_v5 = vld [vmem:[#allocation6 + $0x10] sm:$0xff]  ;;  %v61_v6 = vld [vmem:[#allocation6 + $0x8] sm:$0xff]  ;;  %v60_v7 = vld [vmem:[#allocation6] sm:$0xff] }
   0xf   :  { %161 = vmatpush.msra.mxu2 %v66_v1  ;;  %162 = vmatpush.msra.mxu3 %v66_v1  ;;  %v58_v8 = vld [vmem:[#allocation3 + $0x10] sm:$0xff]  ;;  %v59_v9 = vld [vmem:[#allocation3 + $0x18] sm:$0xff]  ;;  %v56_v10 = vld [vmem:[#allocation3] sm:$0xff] }
  0x10   :  { %90 = vmatpush.msra.mxu0 %v66_v1  ;;  %160 = vmatpush.msra.mxu1 %v66_v1  ;;  %v57_v11 = vld [vmem:[#allocation3 + $0x8] sm:$0xff] }
  0x11   :  { %164 = vmatpush.msra.mxu2 %v65_v2  ;;  %165 = vmatpush.msra.mxu3 %v65_v2 }
  0x12   :  { %91 = vmatpush.msra.mxu0 %v65_v2  ;;  %163 = vmatpush.msra.mxu1 %v65_v2 }
  0x13   :  { %167 = vmatpush.msra.mxu2 %v64_v3  ;;  %168 = vmatpush.msra.mxu3 %v64_v3 }
  0x14   :  { %92 = vmatpush.msra.mxu0 %v64_v3  ;;  %166 = vmatpush.msra.mxu1 %v64_v3 }
  0x15   :  { %170 = vmatpush.msra.mxu2 %v63_v4  ;;  %171 = vmatpush.msra.mxu3 %v63_v4 }
  0x16   :  { %93 = vmatpush.msra.mxu0 %v63_v4  ;;  %169 = vmatpush.msra.mxu1 %v63_v4 }
  0x17   :  { %173 = vmatpush.msra.mxu2 %v62_v5  ;;  %174 = vmatpush.msra.mxu3 %v62_v5 }
  0x18   :  { %94 = vmatpush.msra.mxu0 %v62_v5  ;;  %172 = vmatpush.msra.mxu1 %v62_v5 }
  0x19   :  { %176 = vmatpush.msra.mxu2 %v61_v6  ;;  %177 = vmatpush.msra.mxu3 %v61_v6 }
  0x1a   :  { %95 = vmatpush.msra.mxu0 %v61_v6  ;;  %175 = vmatpush.msra.mxu1 %v61_v6 }
  0x1b   :  { %179 = vmatpush.msra.mxu2 %v60_v7  ;;  %180 = vmatpush.msra.mxu3 %v60_v7 }
  0x1c   :  { %155 = vmatmul.msk.f32.vlgmr.msra.gmra.mxu2 %vm68_vm0, %v58_v8  ;;  %156 = vmatmul.msk.f32.vlgmr.msra.gmra.mxu3 %vm68_vm0, %v59_v9 }
  0x1d   :  { %96 = vmatpush.msra.mxu0 %v60_v7  ;;  %178 = vmatpush.msra.mxu1 %v60_v7 }
  0x1e   :  { %153 = vmatmul.msk.f32.vlgmr.msra.gmra.mxu0 %vm68_vm0, %v56_v10  ;;  %154 = vmatmul.msk.f32.vlgmr.msra.gmra.mxu1 %vm68_vm0, %v57_v11 }
  0x9b   :  { %v98_v12 = vpop.f32.mrf.mxu0  ;;  %v101_v13 = vpop.f32.mrf.mxu1 }
  0x9c   :  { %v125_v14 = vadd.f32 %v98_v12, %v98_v12  ;;  %v126_v15 = vadd.f32 %v101_v13, %v101_v13 }
  0x9e   :  { %129 = vst [vmem:[#allocation8] sm:$0xff] %v125_v14 }
  0x9f   :  { %130 = vst [vmem:[#allocation8 + $0x8] sm:$0xff] %v126_v15  ;;  %v104_v16 = vpop.f32.mrf.mxu2  ;;  %v107_v17 = vpop.f32.mrf.mxu3 }
  0xa0   :  { %v127_v18 = vadd.f32 %v104_v16, %v104_v16  ;;  %v128_v19 = vadd.f32 %v107_v17, %v107_v17 }
  0xa2   :  { %131 = vst [vmem:[#allocation8 + $0x10] sm:$0xff] %v127_v18 }
  0xa3   :  { %132 = vst [vmem:[#allocation8 + $0x18] sm:$0xff] %v128_v19 }
  0xa4   :  { %145 = dma.vmem_to_hbm [thread:$0]  %s138_s1, 512, %s140_s23, [#allocation5], %s265_s17, %s265_s17, %s266_s18  }
  0xa5   :  { %262 = dma.done.wait [#allocation5], 512  }
  0xa6   :  { %263 = vsyncadd [#allocation5], 4294966784 }
  0xa7   :  { %150 = vsyncpa [#allocation4], 1 }
  0xa8   :  { %151 = vsyncpa [#allocation7], 1 }
  0xa9   :  { %152 = vsyncpa [#allocation5], 1 }

</bundles_post_ra>
